<compile_context>
chip_gen: v7x
topology: tpu7x:2x2x1
jax: 0.10.0
libtpu: 0.0.40
codegen_flags: <defaults>
</compile_context>

<pallas_src>
import functools

import jax
import jax.numpy as jnp
from jax.experimental import pallas as pl
from jax.experimental.pallas import tpu as pltpu


# ----------------------------------------------------------------------------
# Pallas kernel: gradient rewiring from GradFunction.backward (sign branch).
# ----------------------------------------------------------------------------
def _grad_rewire_kernel(nn_ref, pred_ref, pt_ref, o_ref, *, scale):
    nn = nn_ref[...].astype(jnp.float32)          # [tb, C]
    pred = pred_ref[...].astype(jnp.float32)      # [tb, C]
    pt = pt_ref[...].astype(jnp.float32)          # [tb, 1]

    s = jnp.sum(nn * pred, axis=1, keepdims=True)  # [tb, 1]
    inv_pt = 1.0 / pt                               # exact (tolerance-tight vs ref)
    grad_source = s * inv_pt                                  # [tb, 1]
    grad_target = s * (-(1.0 - pt) * inv_pt * inv_pt)         # [tb, 1]

    # Build the [tb, 2] output with a lane-index select (no concatenate, no
    # per-column sub-stores).  Padded rows of a partial last tile may hold
    # inf/nan, but Pallas masks their writeback.
    tb, two = o_ref.shape
    col = jax.lax.broadcasted_iota(jnp.int32, (tb, two), 1)
    out = jnp.where(col == 0, grad_source, grad_target) * scale
    o_ref[...] = out.astype(o_ref.dtype)


# ----------------------------------------------------------------------------
# Tiling / VMEM budgeting.
# ----------------------------------------------------------------------------
def _vmem_capacity_bytes():
    try:
        return int(pltpu.get_tpu_info().vmem_capacity_bytes)
    except Exception:
        return 64 * 1024 * 1024  # conservative fallback: v7x per-TC physical VMEM


def _pick_row_tile(batch, n_classes, in_itemsize, vmem_capacity):
    """Byte-budgeted row tile, multiple of 8 (or full batch when batch <= 8)."""
    if batch <= 8:
        return batch  # full-extent block is always legal
    # Budget for the two double-buffered input tiles: ~1/8 of physical VMEM,
    # capped at 8 MiB so it also fits v5e's 16 MiB default scoped limit.
    budget = min(vmem_capacity // 8, 8 * 1024 * 1024)
    per_row = 2 * 2 * n_classes * in_itemsize  # 2 inputs x 2 pipeline buffers
    tb = budget // max(per_row, 1)
    # Guarantee >= 2 grid steps so "parallel" splits rows across v7x's 2 TCs.
    half = -(-batch // 2)           # ceil(batch / 2)
    half8 = -(-half // 8) * 8       # rounded up to a multiple of 8
    tb = min(tb, half8)
    tb = max(8, (tb // 8) * 8)      # sublane-aligned, at least 8
    return tb


def _grad_rewire_pallas(nn_output, prediction, p_t, out_dtype):
    if p_t.ndim == 1:                       # guard (batch,) shaped p_t
        p_t = p_t.reshape(-1, 1)
    batch, n_classes = nn_output.shape
    n_pred = prediction.shape[0]
    n_pt = p_t.shape[0]
    # 10.0 * 0.1 * (1/N_pred) * (1/N_pt) folded into one scale.
    scale = 10.0 * 0.1 / (float(n_pred) * float(n_pt))

    vmem_capacity = _vmem_capacity_bytes()
    in_itemsize = max(jnp.dtype(nn_output.dtype).itemsize,
                      jnp.dtype(prediction.dtype).itemsize)
    tb = _pick_row_tile(batch, n_classes, in_itemsize, vmem_capacity)
    grid = (pl.cdiv(batch, tb),)            # Pallas masks the remainder tile

    kernel = functools.partial(_grad_rewire_kernel, scale=scale)
    return pl.pallas_call(
        kernel,
        out_shape=jax.ShapeDtypeStruct((batch, 2), out_dtype),
        grid=grid,
        in_specs=[
            pl.BlockSpec((tb, n_classes), lambda i: (i, 0)),
            pl.BlockSpec((tb, n_classes), lambda i: (i, 0)),
            pl.BlockSpec((tb, 1), lambda i: (i, 0)),
        ],
        out_specs=pl.BlockSpec((tb, 2), lambda i: (i, 0)),
        compiler_params=pltpu.CompilerParams(
            dimension_semantics=("parallel",),  # rows split across v7x's 2 TCs
            vmem_limit_bytes=int(min(vmem_capacity // 2, 64 * 1024 * 1024)),
        ),
    )(nn_output, prediction, p_t)


# ----------------------------------------------------------------------------
# custom_vjp: forward is identity (zero-copy), backward is the Pallas kernel.
# ----------------------------------------------------------------------------
@jax.custom_vjp
def _grad_layer_with_sign(inp, nn_output, prediction, p_t):
    return inp


def _with_sign_fwd(inp, nn_output, prediction, p_t):
    return inp, (nn_output, prediction, p_t)


def _with_sign_bwd(res, g):
    nn_output, prediction, p_t = res
    # PyTorch backward ignores grad_output in this branch (gradient rewiring).
    grad_input = _grad_rewire_pallas(nn_output, prediction, p_t, g.dtype)
    # PyTorch returns None grads for nn_output / prediction / p_t.  custom_vjp
    # requires cotangents for every input; these zeros are DCE'd because the
    # wrapper stop_gradients those args.
    return (grad_input,
            jnp.zeros_like(nn_output),
            jnp.zeros_like(prediction),
            jnp.zeros_like(p_t))


_grad_layer_with_sign.defvjp(_with_sign_fwd, _with_sign_bwd)


@jax.custom_vjp
def _grad_layer_no_sign(inp):
    return inp


def _no_sign_fwd(inp):
    return inp, None


def _no_sign_bwd(_, g):
    return (10.0 * g,)


_grad_layer_no_sign.defvjp(_no_sign_fwd, _no_sign_bwd)


def grad_layer_forward(inp, nn_output, prediction, p_t, sign_variable):
    """GradLayer.forward: identity on `inp`, with GradFunction's rewired VJP.

    Forward is a zero-copy passthrough (no kernel, no HBM traffic); the Pallas
    kernel runs only in the backward pass when sign_variable is not None.
    """
    if sign_variable is None:
        return _grad_layer_no_sign(inp)
    # sign_variable's *value* is never used by the backward, only its presence.
    # The aux tensors receive no gradient (PyTorch returns None for them).
    nn_output = jax.lax.stop_gradient(nn_output)
    prediction = jax.lax.stop_gradient(prediction)
    p_t = jax.lax.stop_gradient(p_t)
    return _grad_layer_with_sign(inp, nn_output, prediction, p_t)


# ----------------------------------------------------------------------------
# Demo / correctness checks.
# ----------------------------------------------------------------------------
def _ref_rewired_grad(nn_output, prediction, p_t):
    if p_t.ndim == 1:
        p_t = p_t.reshape(-1, 1)
    s = jnp.sum(nn_output * prediction, axis=1, keepdims=True)
    gs = (s / p_t) / prediction.shape[0]
    gt = (s * (-(1.0 - p_t) / p_t ** 2)) / prediction.shape[0]
    return 10.0 * (0.1 * jnp.concatenate([gs, gt], axis=1) / p_t.shape[0])


def _make_inputs(key, batch, n_classes):
    k1, k2, k3, k4 = jax.random.split(key, 4)
    x = jax.random.normal(k1, (batch, 2), dtype=jnp.float32)
    nn_output = jax.random.normal(k2, (batch, n_classes), dtype=jnp.float32)
    prediction = jax.nn.softmax(
        jax.random.normal(k3, (batch, n_classes), dtype=jnp.float32), axis=1)
    # Keep p_t bounded away from 0 so the f32 reference comparison stays tight.
    p_t = 0.1 + 0.8 * jax.nn.sigmoid(
        jax.random.normal(k4, (batch, 1), dtype=jnp.float32))
    return x, nn_output, prediction, p_t


def _check_case(key, batch, n_classes):
    x, nn_output, prediction, p_t = _make_inputs(key, batch, n_classes)
    sign_variable = jnp.ones((1,), dtype=jnp.float32)

    # forward: exact identity, zero-copy
    out = grad_layer_forward(x, nn_output, prediction, p_t, sign_variable)
    out = jax.block_until_ready(out)
    assert out.shape == x.shape and out.dtype == x.dtype
    assert bool(jnp.allclose(out, x)), "GradLayer forward must be identity on input"

    # backward: Pallas gradient-rewiring kernel
    def loss(inp):
        return jnp.sum(grad_layer_forward(inp, nn_output, prediction, p_t,
                                          sign_variable))

    g = jax.block_until_ready(jax.grad(loss)(x))
    ref = _ref_rewired_grad(nn_output, prediction, p_t)
    assert g.shape == x.shape
    assert bool(jnp.allclose(g, ref, rtol=1e-5, atol=1e-6)), \
        f"rewired gradient mismatch (batch={batch}, C={n_classes})"

    # backward, sign_variable=None branch: grad = 10 * upstream gradient
    def loss_none(inp):
        return jnp.sum(grad_layer_forward(inp, nn_output, prediction, p_t, None))

    g_none = jax.block_until_ready(jax.grad(loss_none)(x))
    assert bool(jnp.allclose(g_none, 10.0 * jnp.ones_like(x)))


if __name__ == "__main__":
    key = jax.random.PRNGKey(0)
    k_a, k_b = jax.random.split(key)

    # Small canonical case (single full-extent tile).
    _check_case(k_a, batch=8, n_classes=4)

    # Awkward (non-power-of-two) case: exercises the pl.cdiv grid, the
    # >=2-step parallel split, and the masked partial remainder tile.
    _check_case(k_b, batch=13, n_classes=5)

    print("KERNEL_OK")
</pallas_src>

<mosaic_0001>
module attributes {stable_mosaic.version = 11 : i64} {
  func.func @_grad_rewire_kernel(%arg0: i32, %arg1: memref<8x4xf32, #tpu.memory_space<vmem>>, %arg2: memref<8x4xf32, #tpu.memory_space<vmem>>, %arg3: memref<8x1xf32, #tpu.memory_space<vmem>>, %arg4: memref<8x2xf32, #tpu.memory_space<vmem>>) attributes {dimension_semantics = [#tpu.dimension_semantics<parallel>], iteration_bounds = array<i64: 1>, scalar_prefetch = 0 : i64, scratch_operands = 0 : i64, tpu.core_type = #tpu.core_type<tc>, window_params = [{transform_indices = @transform_0, window_bounds = array<i64: 8, 4>}, {transform_indices = @transform_1, window_bounds = array<i64: 8, 4>}, {transform_indices = @transform_2, window_bounds = array<i64: 8, 1>}, {transform_indices = @transform_3, window_bounds = array<i64: 8, 2>}]} {
    %c0 = arith.constant 0 : index
    %c0_0 = arith.constant 0 : index
    %0 = vector.load %arg1[%c0, %c0_0] : memref<8x4xf32, #tpu.memory_space<vmem>>, vector<8x4xf32>
    %c0_1 = arith.constant 0 : index
    %c0_2 = arith.constant 0 : index
    %1 = vector.load %arg2[%c0_1, %c0_2] : memref<8x4xf32, #tpu.memory_space<vmem>>, vector<8x4xf32>
    %c0_3 = arith.constant 0 : index
    %c0_4 = arith.constant 0 : index
    %2 = vector.load %arg3[%c0_3, %c0_4] : memref<8x1xf32, #tpu.memory_space<vmem>>, vector<8x1xf32>
    %3 = arith.mulf %0, %1 : vector<8x4xf32>
    %cst = arith.constant dense<0.000000e+00> : vector<8xf32>
    %4 = vector.multi_reduction <add>, %3, %cst [1] : vector<8x4xf32> to vector<8xf32>
    %5 = vector.shape_cast %4 : vector<8xf32> to vector<8x1xf32>
    %cst_5 = arith.constant 1.000000e+00 : f32
    %6 = vector.broadcast %cst_5 : f32 to vector<8x1xf32>
    %7 = arith.divf %6, %2 : vector<8x1xf32>
    %8 = arith.mulf %5, %7 : vector<8x1xf32>
    %cst_6 = arith.constant 1.000000e+00 : f32
    %9 = vector.broadcast %cst_6 : f32 to vector<8x1xf32>
    %10 = arith.subf %9, %2 : vector<8x1xf32>
    %cst_7 = arith.constant 0.000000e+00 : f32
    %11 = vector.broadcast %cst_7 : f32 to vector<8x1xf32>
    %12 = arith.subf %11, %10 : vector<8x1xf32>
    %13 = arith.mulf %12, %7 : vector<8x1xf32>
    %14 = arith.mulf %13, %7 : vector<8x1xf32>
    %15 = arith.mulf %5, %14 : vector<8x1xf32>
    %16 = tpu.iota {dimensions = array<i32: 1>} : vector<8x2xi32>
    %c0_i32 = arith.constant 0 : i32
    %17 = vector.broadcast %c0_i32 : i32 to vector<8x2xi32>
    %18 = arith.cmpi eq, %16, %17 : vector<8x2xi32>
    %19 = vector.shape_cast %8 : vector<8x1xf32> to vector<8x1xf32>
    %20 = vector.broadcast %19 : vector<8x1xf32> to vector<8x2xf32>
    %21 = vector.shape_cast %15 : vector<8x1xf32> to vector<8x1xf32>
    %22 = vector.broadcast %21 : vector<8x1xf32> to vector<8x2xf32>
    %23 = arith.select %18, %20, %22 : vector<8x2xi1>, vector<8x2xf32>
    %cst_8 = arith.constant 1.562500e-02 : f32
    %24 = vector.broadcast %cst_8 : f32 to vector<8x2xf32>
    %25 = arith.mulf %23, %24 : vector<8x2xf32>
    %c0_9 = arith.constant 0 : index
    %c0_10 = arith.constant 0 : index
    %26 = vector.load %arg4[%c0_9, %c0_10] : memref<8x2xf32, #tpu.memory_space<vmem>>, vector<8x2xf32>
    tpu.vector_store %arg4[%c0_9, %c0_10], %25 {strides = array<i32>} : memref<8x2xf32, #tpu.memory_space<vmem>>, vector<8x2xf32>,
    return
  }
  func.func @transform_0(%arg0: i32) -> (i32, i32) {
    %c0_i32 = arith.constant 0 : i32
    %c0_i32_0 = arith.constant 0 : i32
    return %arg0, %c0_i32 : i32, i32
  }
  func.func @transform_1(%arg0: i32) -> (i32, i32) {
    %c0_i32 = arith.constant 0 : i32
    %c0_i32_0 = arith.constant 0 : i32
    return %arg0, %c0_i32 : i32, i32
  }
  func.func @transform_2(%arg0: i32) -> (i32, i32) {
    %c0_i32 = arith.constant 0 : i32
    %c0_i32_0 = arith.constant 0 : i32
    return %arg0, %c0_i32 : i32, i32
  }
  func.func @transform_3(%arg0: i32) -> (i32, i32) {
    %c0_i32 = arith.constant 0 : i32
    %c0_i32_0 = arith.constant 0 : i32
    return %arg0, %c0_i32 : i32, i32
  }
}

</mosaic_0001>

<bundles_post_ra>
// kernel: tpu_custom_call.1
= control target key start
LH: loop header
LB: loop body
LE: loop exit
PB: predicated region body
PF: predicated region fallthrough
CT: control target
= control target key end

     0   :  { %vm18_vm0 = vcmask 31744   ;;  %v56_v4 = vmov 0   ;;  %v30_v14 = vlaneseq  ;;  %vm45_vm2 = vcmask 15360   ;;  %s89_s0 = inlined_call_operand.vmem [shape: f32[8,4], index: 0, kind: input, shape index: {}]   ;;  %s90_s1 = inlined_call_operand.vmem [shape: f32[8,4], index: 1, kind: input, shape index: {}]   ;;  %s91_s2 = inlined_call_operand.vmem [shape: f32[8,1], index: 2, kind: input, shape index: {}]   ;;  %s92_s3 = inlined_call_operand.vmem [shape: f32[8,2], index: 3, kind: output, shape index: {}]  }
   0x1   :  { %v14_v0 = vld [vmem:[%s89_s0] sm:$0xff]  ;;  %53 = vset.pattern.permute.xlu1 %v56_v4  ;;  %52 = vset.pattern.permute.xlu0 %v56_v4 }
   0x2   :  { %v15_v1 = vld [vmem:[%s90_s1] sm:$0xff]  ;;  %v31_v15 = vand.u32 127, %v30_v14 }
   0x3   :  { %v17_v2 = vmul.f32 %v15_v1, %v14_v0  ;;  %v16_v5 = vld [vmem:[%s91_s2] sm:$0xff] }
   0x4   :  { %54 = vrcp.f32 %v16_v5  ;;  %v25_v6 = vsub.f32 1.0, %v16_v5  ;;  %vm32_vm1 = vcmp.eq.s32.totalorder %v31_v15, 0 }
   0x5   :  { %v19_v3 = vsel %vm18_vm0, %v17_v2, 0.0 }
   0x6   :  { %20 = vadd.xlane.f32.xlu0 %v19_v3  ;;  %v26_v7 = vsub.f32 0.0, %v25_v6 }
   0xe   :  { %v55_v8 = vpop.eup %54 }
   0xf   :  { %v27_v9 = vmul.f32 %v55_v8, %v26_v7 }
  0x11   :  { %v28_v10 = vmul.f32 %v55_v8, %v27_v9 }
  0x93   :  { %v21_v11 = vpop.xlane.xlu0 %20 }
  0x94   :  { %v24_v12 = vmul.f32 %v55_v8, %v21_v11  ;;  %v29_v13 = vmul.f32 %v28_v10, %v21_v11 }
  0x96   :  { %40 = vperm.xlu1 %53, %v29_v13   ;;  %35 = vperm.xlu0 %52, %v24_v12  }
 0x115   :  { %v41_v16 = vpop.permute.xlu1 %40  ;;  %v36_v17 = vpop.permute.xlu0 %35 }
 0x116   :  { %v43_v18 = vsel %vm32_vm1, %v36_v17, %v41_v16 }
 0x117   :  { %v44_v19 = vmul.f32 0.015625, %v43_v18 }
 0x119   :  { %46 = vst.msk [vmem:[%s92_s3] sm:$0xff] %vm45_vm2, %v44_v19 }

</bundles_post_ra>
